<compile_context>
chip_gen: v6e
topology: v6e:2x2x1
jax: 0.10.0
libtpu: 0.0.40
codegen_flags: <defaults>
</compile_context>

<pallas_src>
import functools

import jax
import jax.numpy as jnp
from jax.experimental import pallas as pl
from jax.experimental.pallas import tpu as pltpu


# ----------------------------------------------------------------------------
# Fused Pallas kernel: relu(adj @ x @ w1 + b1) -> adj @ h @ w2 + b2 -> log_softmax
# ----------------------------------------------------------------------------
def _gcn_fused_kernel(x_ref, adj_ref, w1_ref, b1_ref, w2_ref, b2_ref,
                      logits_ref, prob_ref, *, out_dim):
    """Whole GCN forward for one graph, all intermediates kept in VMEM.

    x:   [N, Cin] f32     adj: [N, N] bf16
    w1:  [Cin, Chid] f32  b1:  [1, Chid] f32
    w2:  [Chid, Cpad] f32 b2:  [1, Cpad] f32   (zero-padded to lane width)
    out: logits [N, Cpad], prob [N, Cpad] (valid data in first `out_dim` lanes)
    """
    adj = adj_ref[...]                                   # bf16 MXU operand
    x = x_ref[...].astype(jnp.bfloat16)                  # bf16 MXU operand

    # Layer 1: Cin < Chid  =>  (adj @ x) @ w1  (N^2 term scales with Cin).
    ax = jnp.dot(adj, x, preferred_element_type=jnp.float32)
    h = jnp.dot(ax, w1_ref[...], preferred_element_type=jnp.float32) + b1_ref[...]
    h = jnp.maximum(h, 0.0)                              # ReLU in f32 (VPU)

    # Layer 2: Chid < Cpad =>  (adj @ h) @ w2  (N^2 term scales with Chid).
    ah = jnp.dot(adj, h.astype(jnp.bfloat16), preferred_element_type=jnp.float32)
    logits = jnp.dot(ah, w2_ref[...], preferred_element_type=jnp.float32) + b2_ref[...]

    # Fused row-wise log_softmax over the valid (unpadded) lanes only (f32).
    lanes = jax.lax.broadcasted_iota(jnp.int32, logits.shape, 1)
    valid = lanes < out_dim
    masked = jnp.where(valid, logits, -jnp.inf)
    m = jnp.max(masked, axis=1, keepdims=True)
    s = logits - m
    e = jnp.where(valid, jnp.exp(s), 0.0)                # EUP exp; padded lanes zeroed
    lse = jnp.log(jnp.sum(e, axis=1, keepdims=True))
    prob = jnp.where(valid, s - lse, 0.0)

    # Padded lanes of `logits` are already exactly 0 (zero-padded w2/b2): no mask.
    logits_ref[...] = logits.astype(logits_ref.dtype)
    prob_ref[...] = prob.astype(prob_ref.dtype)


# ----------------------------------------------------------------------------
# One-time parameter prep (hoisted out of the per-call wrapper)
# ----------------------------------------------------------------------------
def prepare_gcn_params(params, *, lane_pad=128):
    """Zero-pad the output projection to a lane-dense width (full-width stores)."""
    w1, b1, w2, b2 = params
    chid, cout = w2.shape
    cpad = max(lane_pad, cout)
    w2p = jnp.zeros((chid, cpad), w2.dtype).at[:, :cout].set(w2)
    b2p = jnp.zeros((1, cpad), b2.dtype).at[:, :cout].set(b2)
    return w1, b1, w2p, b2p


# ----------------------------------------------------------------------------
# Wrapper
# ----------------------------------------------------------------------------
def gcn_forward(x, adj, prepped_params, *, out_dim):
    """GCN.forward (eval mode). Returns (logits, log_probs), shapes [N, out_dim]."""
    w1, b1, w2p, b2p = prepped_params
    n, cin = x.shape
    chid = w1.shape[1]
    cpad = w2p.shape[1]

    # bf16 adjacency: halves the dominant HBM/VMEM bytes; MXU is bf16-native.
    adj_bf16 = adj.astype(jnp.bfloat16)

    kernel = functools.partial(_gcn_fused_kernel, out_dim=out_dim)

    flops = (2 * n * n * cin + 2 * n * cin * chid
             + 2 * n * n * chid + 2 * n * chid * cpad)
    bytes_accessed = (2 * n * n                              # adj (bf16)
                      + 4 * (x.size + w1.size + b1.size + w2p.size + b2p.size)
                      + 4 * 2 * n * cpad)                    # two f32 outputs
    cost = pl.CostEstimate(flops=flops, transcendentals=n * cpad,
                           bytes_accessed=bytes_accessed)

    logits_pad, prob_pad = pl.pallas_call(
        kernel,
        out_shape=(jax.ShapeDtypeStruct((n, cpad), x.dtype),
                   jax.ShapeDtypeStruct((n, cpad), x.dtype)),
        in_specs=[
            pl.BlockSpec(x.shape, lambda: (0, 0)),
            pl.BlockSpec(adj_bf16.shape, lambda: (0, 0)),
            pl.BlockSpec(w1.shape, lambda: (0, 0)),
            pl.BlockSpec(b1.shape, lambda: (0, 0)),
            pl.BlockSpec(w2p.shape, lambda: (0, 0)),
            pl.BlockSpec(b2p.shape, lambda: (0, 0)),
        ],
        out_specs=(pl.BlockSpec((n, cpad), lambda: (0, 0)),
                   pl.BlockSpec((n, cpad), lambda: (0, 0))),
        compiler_params=pltpu.CompilerParams(
            vmem_limit_bytes=32 * 1024 * 1024),  # safe on v5e/v6e/v7x; kernel uses <1 MiB
        cost_estimate=cost,
    )(x, adj_bf16, w1, b1, w2p, b2p)

    # Slice off the padded lanes to recover the module's output shapes.
    return logits_pad[:, :out_dim], prob_pad[:, :out_dim]


# ----------------------------------------------------------------------------
# Deterministic parameter init (mirrors nn.Linear reset_parameters + zero bias)
# ----------------------------------------------------------------------------
def init_gcn_params(key, input_dim, hidden_dim, output_dim, dtype=jnp.float32):
    k1, k2 = jax.random.split(key)
    bound1 = 1.0 / (input_dim ** 0.5)
    w1 = jax.random.uniform(k1, (input_dim, hidden_dim), dtype, -bound1, bound1)
    b1 = jnp.zeros((1, hidden_dim), dtype)   # GCNLayer.reset_paramters -> zeros_
    bound2 = 1.0 / (hidden_dim ** 0.5)
    w2 = jax.random.uniform(k2, (hidden_dim, output_dim), dtype, -bound2, bound2)
    b2 = jnp.zeros((1, output_dim), dtype)
    return w1, b1, w2, b2


# ----------------------------------------------------------------------------
# Main
# ----------------------------------------------------------------------------
if __name__ == "__main__":
    N = 128          # number of graph nodes (sublane/lane aligned)
    INPUT_DIM = 16
    HIDDEN_DIM = 32
    OUTPUT_DIM = 8

    key = jax.random.PRNGKey(0)
    kx, kadj, kparams = jax.random.split(key, 3)

    x = jax.random.normal(kx, (N, INPUT_DIM), jnp.float32)

    # Symmetric normalized adjacency with self-loops (typical GCN input).
    a = (jax.random.uniform(kadj, (N, N)) > 0.9).astype(jnp.float32)
    a = jnp.maximum(a, a.T) + jnp.eye(N, dtype=jnp.float32)
    deg = jnp.sum(a, axis=1, keepdims=True)
    adj = a / jnp.sqrt(deg) / jnp.sqrt(deg.T)

    params = init_gcn_params(kparams, INPUT_DIM, HIDDEN_DIM, OUTPUT_DIM)
    w1, b1, w2, b2 = params
    prepped = prepare_gcn_params(params)          # one-time pad, outside the jit hot path

    fwd = jax.jit(functools.partial(gcn_forward, out_dim=OUTPUT_DIM))
    logits, prob = fwd(x, adj, prepped)
    jax.block_until_ready((logits, prob))
    assert logits.shape == (N, OUTPUT_DIM) and prob.shape == (N, OUTPUT_DIM)

    # Matched reference: same association + bf16 MXU operands, f32 accumulation.
    adj_bf = adj.astype(jnp.bfloat16)
    ax = jnp.dot(adj_bf, x.astype(jnp.bfloat16), preferred_element_type=jnp.float32)
    h_m = jnp.maximum(jnp.dot(ax, w1) + b1, 0.0)
    ah = jnp.dot(adj_bf, h_m.astype(jnp.bfloat16), preferred_element_type=jnp.float32)
    logits_m = jnp.dot(ah, w2) + b2
    prob_m = jax.nn.log_softmax(logits_m, axis=1)
    assert jnp.allclose(logits, logits_m, atol=2e-3, rtol=2e-3), "logits mismatch (matched ref)"
    assert jnp.allclose(prob, prob_m, atol=2e-3, rtol=2e-3), "log_softmax mismatch (matched ref)"

    # Semantic sanity vs. the f32 PyTorch-association reference (loose tolerance:
    # bf16 MXU operands + (adj@x)@w1 reassociation differ from f32 adj@(x@w1)).
    h_ref = jnp.maximum(adj @ (x @ w1) + b1, 0.0)
    logits_ref = adj @ (h_ref @ w2) + b2
    prob_ref = jax.nn.log_softmax(logits_ref, axis=1)
    assert jnp.allclose(logits, logits_ref, atol=3e-2, rtol=3e-2), "logits drift vs f32 ref"
    assert jnp.allclose(prob, prob_ref, atol=3e-2, rtol=3e-2), "log_softmax drift vs f32 ref"

    print("KERNEL_OK")
</pallas_src>

<mosaic_0001>
module attributes {stable_mosaic.version = 11 : i64} {
  func.func @_gcn_fused_kernel(%arg0: memref<128x16xf32, #tpu.memory_space<vmem>>, %arg1: memref<128x128xbf16, #tpu.memory_space<vmem>>, %arg2: memref<16x32xf32, #tpu.memory_space<vmem>>, %arg3: memref<1x32xf32, #tpu.memory_space<vmem>>, %arg4: memref<32x128xf32, #tpu.memory_space<vmem>>, %arg5: memref<1x128xf32, #tpu.memory_space<vmem>>, %arg6: memref<128x128xf32, #tpu.memory_space<vmem>>, %arg7: memref<128x128xf32, #tpu.memory_space<vmem>>) attributes {dimension_semantics = [], scalar_prefetch = 0 : i64, scratch_operands = 0 : i64, tpu.core_type = #tpu.core_type<tc>} {
    %c0 = arith.constant 0 : index
    %c0_0 = arith.constant 0 : index
    %0 = vector.load %arg1[%c0, %c0_0] : memref<128x128xbf16, #tpu.memory_space<vmem>>, vector<128x128xbf16>
    %c0_1 = arith.constant 0 : index
    %c0_2 = arith.constant 0 : index
    %1 = vector.load %arg0[%c0_1, %c0_2] : memref<128x16xf32, #tpu.memory_space<vmem>>, vector<128x16xf32>
    %2 = arith.truncf %1 : vector<128x16xf32> to vector<128x16xbf16>
    %cst = arith.constant dense<0.000000e+00> : vector<128x16xf32>
    %3 = tpu.matmul %0, %2, %cst {dimension_numbers = #tpu.dot_dimension_numbers<[1], [0], [0], [1], [0, 0, 1, 1], [], []>} : vector<128x128xbf16>, vector<128x16xbf16>, vector<128x16xf32> -> vector<128x16xf32>
    %c0_3 = arith.constant 0 : index
    %c0_4 = arith.constant 0 : index
    %4 = vector.load %arg2[%c0_3, %c0_4] : memref<16x32xf32, #tpu.memory_space<vmem>>, vector<16x32xf32>
    %cst_5 = arith.constant dense<0.000000e+00> : vector<128x32xf32>
    %5 = tpu.matmul %3, %4, %cst_5 {dimension_numbers = #tpu.dot_dimension_numbers<[1], [0], [0], [1], [0, 0, 1, 1], [], []>} : vector<128x16xf32>, vector<16x32xf32>, vector<128x32xf32> -> vector<128x32xf32>
    %c0_6 = arith.constant 0 : index
    %c0_7 = arith.constant 0 : index
    %6 = vector.load %arg3[%c0_6, %c0_7] : memref<1x32xf32, #tpu.memory_space<vmem>>, vector<1x32xf32>
    %7 = vector.broadcast %6 : vector<1x32xf32> to vector<128x32xf32>
    %8 = arith.addf %5, %7 : vector<128x32xf32>
    %cst_8 = arith.constant 0.000000e+00 : f32
    %9 = vector.broadcast %cst_8 : f32 to vector<128x32xf32>
    %10 = arith.maximumf %8, %9 : vector<128x32xf32>
    %11 = arith.truncf %10 : vector<128x32xf32> to vector<128x32xbf16>
    %cst_9 = arith.constant dense<0.000000e+00> : vector<128x32xf32>
    %12 = tpu.matmul %0, %11, %cst_9 {dimension_numbers = #tpu.dot_dimension_numbers<[1], [0], [0], [1], [0, 0, 1, 1], [], []>} : vector<128x128xbf16>, vector<128x32xbf16>, vector<128x32xf32> -> vector<128x32xf32>
    %c0_10 = arith.constant 0 : index
    %c0_11 = arith.constant 0 : index
    %13 = vector.load %arg4[%c0_10, %c0_11] : memref<32x128xf32, #tpu.memory_space<vmem>>, vector<32x128xf32>
    %cst_12 = arith.constant dense<0.000000e+00> : vector<128x128xf32>
    %14 = tpu.matmul %12, %13, %cst_12 {dimension_numbers = #tpu.dot_dimension_numbers<[1], [0], [0], [1], [0, 0, 1, 1], [], []>} : vector<128x32xf32>, vector<32x128xf32>, vector<128x128xf32> -> vector<128x128xf32>
    %c0_13 = arith.constant 0 : index
    %c0_14 = arith.constant 0 : index
    %15 = vector.load %arg5[%c0_13, %c0_14] : memref<1x128xf32, #tpu.memory_space<vmem>>, vector<1x128xf32>
    %16 = vector.broadcast %15 : vector<1x128xf32> to vector<128x128xf32>
    %17 = arith.addf %14, %16 : vector<128x128xf32>
    %18 = tpu.iota {dimensions = array<i32: 1>} : vector<128x128xi32>
    %c8_i32 = arith.constant 8 : i32
    %19 = vector.broadcast %c8_i32 : i32 to vector<128x128xi32>
    %20 = arith.cmpi slt, %18, %19 : vector<128x128xi32>
    %cst_15 = arith.constant 0xFF800000 : f32
    %21 = vector.broadcast %cst_15 : f32 to vector<128x128xf32>
    %22 = arith.select %20, %17, %21 : vector<128x128xi1>, vector<128x128xf32>
    %cst_16 = arith.constant dense<0xFF800000> : vector<128xf32>
    %23 = vector.multi_reduction <maximumf>, %22, %cst_16 [1] : vector<128x128xf32> to vector<128xf32>
    %24 = vector.shape_cast %23 : vector<128xf32> to vector<128x1xf32>
    %25 = vector.broadcast %24 : vector<128x1xf32> to vector<128x128xf32>
    %26 = arith.subf %17, %25 : vector<128x128xf32>
    %27 = math.exp %26 : vector<128x128xf32>
    %cst_17 = arith.constant 0.000000e+00 : f32
    %28 = vector.broadcast %cst_17 : f32 to vector<128x128xf32>
    %29 = arith.select %20, %27, %28 : vector<128x128xi1>, vector<128x128xf32>
    %cst_18 = arith.constant dense<0.000000e+00> : vector<128xf32>
    %30 = vector.multi_reduction <add>, %29, %cst_18 [1] : vector<128x128xf32> to vector<128xf32>
    %31 = vector.shape_cast %30 : vector<128xf32> to vector<128x1xf32>
    %32 = math.log %31 : vector<128x1xf32>
    %33 = vector.broadcast %32 : vector<128x1xf32> to vector<128x128xf32>
    %34 = arith.subf %26, %33 : vector<128x128xf32>
    %cst_19 = arith.constant 0.000000e+00 : f32
    %35 = vector.broadcast %cst_19 : f32 to vector<128x128xf32>
    %36 = arith.select %20, %34, %35 : vector<128x128xi1>, vector<128x128xf32>
    %c0_20 = arith.constant 0 : index
    %c0_21 = arith.constant 0 : index
    %37 = vector.load %arg6[%c0_20, %c0_21] : memref<128x128xf32, #tpu.memory_space<vmem>>, vector<128x128xf32>
    tpu.vector_store %arg6[%c0_20, %c0_21], %17 {strides = array<i32>} : memref<128x128xf32, #tpu.memory_space<vmem>>, vector<128x128xf32>,
    %c0_22 = arith.constant 0 : index
    %c0_23 = arith.constant 0 : index
    %38 = vector.load %arg7[%c0_22, %c0_23] : memref<128x128xf32, #tpu.memory_space<vmem>>, vector<128x128xf32>
    tpu.vector_store %arg7[%c0_22, %c0_23], %36 {strides = array<i32>} : memref<128x128xf32, #tpu.memory_space<vmem>>, vector<128x128xf32>,
    return
  }
}

</mosaic_0001>

<bundles_post_ra>
// kernel: gcn_forward.1
= control target key start
LH: loop header
LB: loop body
LE: loop exit
PB: predicated region body
PF: predicated region fallthrough
CT: control target
= control target key end

     0   :  { %vm220_vm0 = vcmask 130048   ;;  %vm546_vm1 = vcmask 261120   ;;  %s1888_s0 = inlined_call_operand.vmem [shape: f32[128,16], index: 0, kind: input, shape index: {}]   ;;  %s1889_s1 = inlined_call_operand.vmem [shape: bf16[128,128], index: 1, kind: input, shape index: {}]   ;;  %s1890_s2 = inlined_call_operand.vmem [shape: f32[16,32], index: 2, kind: input, shape index: {}]   ;;  %s1891_s4 = inlined_call_operand.vmem [shape: f32[32,128], index: 4, kind: input, shape index: {}]   ;;  %s1892_s3 = inlined_call_operand.vmem [shape: f32[1,32], index: 3, kind: input, shape index: {}]   ;;  %s1893_s5 = inlined_call_operand.vmem [shape: f32[1,128], index: 5, kind: input, shape index: {}]   ;;  %s1894_s6 = inlined_call_operand.vmem [shape: f32[128,128], index: 6, kind: output, shape index: {0}]   ;;  %s1895_s7 = inlined_call_operand.vmem [shape: f32[128,128], index: 7, kind: output, shape index: {1}]  }
   0x1   :  { %v56_v0 = vld [vmem:[%s1888_s0 + $0x70] sm:$0xff]  ;;  %v57_v1 = vld [vmem:[%s1888_s0 + $0x78] sm:$0xff]  ;;  %v54_v2 = vld [vmem:[%s1888_s0 + $0x60] sm:$0xff] }
   0x2   :  { %v65_v3 = vpack.c.bf16 %v57_v1, %v56_v0  ;;  %v55_v4 = vld [vmem:[%s1888_s0 + $0x68] sm:$0xff]  ;;  %v52_v6 = vld [vmem:[%s1888_s0 + $0x50] sm:$0xff]  ;;  %v53_v7 = vld [vmem:[%s1888_s0 + $0x58] sm:$0xff] }
   0x3   :  { %v64_v5 = vpack.c.bf16 %v55_v4, %v54_v2  ;;  %v50_v8 = vld [vmem:[%s1888_s0 + $0x40] sm:$0xff]  ;;  %v63_v9 = vpack.c.bf16 %v53_v7, %v52_v6  ;;  %v51_v10 = vld [vmem:[%s1888_s0 + $0x48] sm:$0xff]  ;;  %v48_v13 = vld [vmem:[%s1888_s0 + $0x30] sm:$0xff] }
   0x4   :  { %1103 = vmatprep.subr.bf16.mxu0 %v65_v3  ;;  %v1374_v11 = vld [vmem:[%s1889_s1] sm:$0xff]   ;;  %v62_v12 = vpack.c.bf16 %v51_v10, %v50_v8  ;;  %v49_v14 = vld [vmem:[%s1888_s0 + $0x38] sm:$0xff]  ;;  %v47_v17 = vld [vmem:[%s1888_s0 + $0x28] sm:$0xff] }
   0x5   :  { %1104 = vmatpush3.bf16.msra.mxu0 %v65_v3  ;;  %1119 = vmatprep.mubr.bf16.mxu0 %v1374_v11  ;;  %v61_v15 = vpack.c.bf16 %v49_v14, %v48_v13  ;;  %v46_v16 = vld [vmem:[%s1888_s0 + $0x20] sm:$0xff]  ;;  %v44_v19 = vld [vmem:[%s1888_s0 + $0x10] sm:$0xff]  ;;  %v45_v20 = vld [vmem:[%s1888_s0 + $0x18] sm:$0xff] }
   0x6   :  { %1105 = vmatprep.subr.bf16.mxu0 %v64_v5  ;;  %v60_v18 = vpack.c.bf16 %v47_v17, %v46_v16  ;;  %v59_v21 = vpack.c.bf16 %v45_v20, %v44_v19  ;;  %v42_v22 = vld [vmem:[%s1888_s0] sm:$0xff]  ;;  %v43_v23 = vld [vmem:[%s1888_s0 + $0x8] sm:$0xff]  ;;  %v1409_v26 = vld [vmem:[%s1889_s1 + $0x10] sm:$0xff]  }
   0x7   :  { %v58_v24 = vpack.c.bf16 %v43_v23, %v42_v22  ;;  %v1404_v25 = vld [vmem:[%s1889_s1 + $0x8] sm:$0xff]   ;;  %v1416_v27 = vld [vmem:[%s1889_s1 + $0x18] sm:$0xff]   ;;  %v1421_v28 = vld [vmem:[%s1889_s1 + $0x20] sm:$0xff]  }
   0x8   :  { %v1428_v29 = vld [vmem:[%s1889_s1 + $0x28] sm:$0xff]   ;;  %v1433_v30 = vld [vmem:[%s1889_s1 + $0x30] sm:$0xff]   ;;  %v1440_v31 = vld [vmem:[%s1889_s1 + $0x38] sm:$0xff]  }
   0x9   :  { %1106 = vmatpush3.bf16.msra.mxu0 %v64_v5  ;;  %v212_v32 = vld [vmem:[%s1890_s2 + $0x8] sm:$0xff]  ;;  %v211_v33 = vld [vmem:[%s1890_s2] sm:$0xff]  ;;  %v1469_v50 = vld [vmem:[%s1891_s4 + $0x18] sm:$0xff] }
   0xa   :  { %1107 = vmatprep.subr.bf16.mxu0 %v63_v9  ;;  %1135 = vmatprep.subr.mxu1 %v212_v32  ;;  %v1474_v51 = vld [vmem:[%s1891_s4 + $0x10] sm:$0xff]  ;;  %v1481_v52 = vld [vmem:[%s1891_s4 + $0x8] sm:$0xff]  ;;  %v1488_v53 = vld [vmem:[%s1891_s4] sm:$0xff] }
   0xb   :  { %1136 = vmatpush3.msra.mxu1 %v212_v32  ;;  %v999_v4 = vld [vmem:[%s1892_s3] ss:$0 sm:$0xff] }
   0xc   :  { %1137 = vmatprep.subr.mxu1 %v211_v33 }
   0xd   :  { %1108 = vmatpush3.bf16.msra.mxu0 %v63_v9  ;;  %1138 = vmatpush3.msra.mxu1 %v211_v33 }
   0xe   :  { %1109 = vmatprep.subr.bf16.mxu0 %v62_v12 }
  0x11   :  { %1110 = vmatpush3.bf16.msra.mxu0 %v62_v12 }
  0x12   :  { %1111 = vmatprep.subr.bf16.mxu0 %v61_v15 }
  0x15   :  { %1112 = vmatpush3.bf16.msra.mxu0 %v61_v15 }
  0x16   :  { %1113 = vmatprep.subr.bf16.mxu0 %v60_v18 }
  0x19   :  { %1114 = vmatpush3.bf16.msra.mxu0 %v60_v18 }
  0x1a   :  { %1115 = vmatprep.subr.bf16.mxu0 %v59_v21 }
  0x1d   :  { %1116 = vmatpush3.bf16.msra.mxu0 %v59_v21 }
  0x1e   :  { %1117 = vmatprep.subr.bf16.mxu0 %v58_v24 }
  0x21   :  { %1118 = vmatpush3.bf16.msra.mxu0 %v58_v24 }
  0x22   :  { %1195 = vmatprep.subr.mxu0 %v1469_v50 }
  0x24   :  { %1120 = vmatmul.mubr.bf16.vlgmr.msra.gmra.mxu0 %v1404_v25 }
  0x25   :  { %1123 = vmatprep.mubr.bf16.mxu0 %v1409_v26  ;;  %1196 = vmatpush3.msra.mxu0 %v1469_v50 }
  0x26   :  { %1197 = vmatprep.subr.mxu0 %v1474_v51 }
  0x27   :  { %1198 = vmatpush3.msra.mxu0 %v1474_v51 }
  0x28   :  { %1199 = vmatprep.subr.mxu0 %v1481_v52 }
  0x29   :  { %1200 = vmatpush3.msra.mxu0 %v1481_v52 }
  0x2a   :  { %1201 = vmatprep.subr.mxu0 %v1488_v53 }
  0x2b   :  { %1202 = vmatpush3.msra.mxu0 %v1488_v53 }
  0x2c   :  { %1124 = vmatmul.mubr.bf16.gmra.mxu0 %v1416_v27 }
  0x2d   :  { %1127 = vmatprep.mubr.bf16.mxu0 %v1421_v28 }
  0x34   :  { %1128 = vmatmul.mubr.bf16.gmra.mxu0 %v1428_v29 }
  0x35   :  { %1131 = vmatprep.mubr.bf16.mxu0 %v1433_v30 }
  0x3c   :  { %1132 = vmatmul.mubr.bf16.gmra.mxu0 %v1440_v31 }
  0xe4   :  { %v1121_v34 = vpop.f32.mrf.mxu0 }
  0xe6   :  { %v148_v35 = vpop.f32.mrf.mxu0 }
  0xe7   :  { %1139 = vmatprep.mubr.msk.f32.mxu1 %vm220_vm0, %v148_v35 }
  0xe8   :  { %v1122_v36 = vpop.f32.mrf.mxu0 }
  0xea   :  { %v151_v37 = vpop.f32.mrf.mxu0 }
  0xeb   :  { %1140 = vmatmul.mubr.msk.f32.vlgmr.msra.gmra.mxu1 %vm220_vm0, %v151_v37 }
  0xec   :  { %v1125_v38 = vpop.f32.mrf.mxu0  ;;  %1142 = vmatprep.mubr.msk.f32.mxu1 %vm220_vm0, %v1121_v34 }
  0xee   :  { %v164_v39 = vpop.f32.mrf.mxu0 }
  0xef   :  { %1143 = vmatmul.mubr.msk.f32.gmra.mxu1 %vm220_vm0, %v1122_v36 }
  0xf0   :  { %v1126_v40 = vpop.f32.mrf.mxu0  ;;  %1145 = vmatprep.mubr.msk.f32.mxu1 %vm220_vm0, %v164_v39 }
  0xf2   :  { %v167_v41 = vpop.f32.mrf.mxu0 }
  0xf3   :  { %1146 = vmatmul.mubr.msk.f32.gmra.mxu1 %vm220_vm0, %v167_v41 }
  0xf4   :  { %v1129_v42 = vpop.f32.mrf.mxu0  ;;  %1148 = vmatprep.mubr.msk.f32.mxu1 %vm220_vm0, %v1125_v38 }
  0xf6   :  { %v180_v43 = vpop.f32.mrf.mxu0 }
  0xf7   :  { %1149 = vmatmul.mubr.msk.f32.gmra.mxu1 %vm220_vm0, %v1126_v40 }
  0xf8   :  { %v1130_v44 = vpop.f32.mrf.mxu0  ;;  %1151 = vmatprep.mubr.msk.f32.mxu1 %vm220_vm0, %v180_v43 }
  0xfa   :  { %v183_v45 = vpop.f32.mrf.mxu0 }
  0xfb   :  { %1152 = vmatmul.mubr.msk.f32.gmra.mxu1 %vm220_vm0, %v183_v45 }
  0xfc   :  { %v1133_v46 = vpop.f32.mrf.mxu0  ;;  %1154 = vmatprep.mubr.msk.f32.mxu1 %vm220_vm0, %v1129_v42 }
  0xfe   :  { %v196_v47 = vpop.f32.mrf.mxu0 }
  0xff   :  { %1155 = vmatmul.mubr.msk.f32.gmra.mxu1 %vm220_vm0, %v1130_v44 }
 0x100   :  { %v1134_v48 = vpop.f32.mrf.mxu0  ;;  %1157 = vmatprep.mubr.msk.f32.mxu1 %vm220_vm0, %v196_v47 }
 0x102   :  { %v199_v49 = vpop.f32.mrf.mxu0 }
 0x103   :  { %1158 = vmatmul.mubr.msk.f32.gmra.mxu1 %vm220_vm0, %v199_v49 }
 0x104   :  { %1160 = vmatprep.mubr.msk.f32.mxu1 %vm220_vm0, %v1133_v46 }
 0x107   :  { %1161 = vmatmul.mubr.msk.f32.gmra.mxu1 %vm220_vm0, %v1134_v48 }
 0x108   :  { %1179 = vmatprep.mubr.bf16.mxu1 %v1374_v11 }
 0x1ab   :  { %v1141_v54 = vpop.f32.mrf.mxu1 }
 0x1ac   :  { %v341_v48 = vadd.f32 %v1141_v54, %v999_v4 }
 0x1ad   :  { %v335_v55 = vpop.f32.mrf.mxu1 }
 0x1ae   :  { %v336_v45 = vadd.f32 %v999_v4, %v335_v55 }
 0x1af   :  { %v1144_v56 = vpop.f32.mrf.mxu1 }
 0x1b0   :  { %v351_v43 = vadd.f32 %v1144_v56, %v999_v4 }
 0x1b1   :  { %v345_v57 = vpop.f32.mrf.mxu1 }
 0x1b2   :  { %v346_v40 = vadd.f32 %v999_v4, %v345_v57  ;;  %v417_v49 = vmax.f32 %v351_v43, 0.0 }
 0x1b3   :  { %v1147_v58 = vpop.f32.mrf.mxu1 }
 0x1b4   :  { %v361_v38 = vadd.f32 %v1147_v58, %v999_v4  ;;  %v416_v46 = vmax.f32 %v346_v40, 0.0  ;;  %v415_v58 = vmax.f32 %v341_v48, 0.0 }
 0x1b5   :  { %v355_v59 = vpop.f32.mrf.mxu1 }
 0x1b6   :  { %v356_v35 = vadd.f32 %v999_v4, %v355_v59  ;;  %v419_v44 = vmax.f32 %v361_v38, 0.0  ;;  %v414_v59 = vmax.f32 %v336_v45, 0.0 }
 0x1b7   :  { %v1150_v60 = vpop.f32.mrf.mxu1 }
 0x1b8   :  { %v371_v33 = vadd.f32 %v1150_v60, %v999_v4  ;;  %v418_v41 = vmax.f32 %v356_v35, 0.0  ;;  %v431_v60 = vpack.c.bf16 %v417_v49, %v416_v46 }
 0x1b9   :  { %v365_v61 = vpop.f32.mrf.mxu1 }
 0x1ba   :  { %v366_v23 = vadd.f32 %v999_v4, %v365_v61  ;;  %v421_v39 = vmax.f32 %v371_v33, 0.0  ;;  %v432_v47 = vpack.c.bf16 %v419_v44, %v418_v41  ;;  %v430_v61 = vpack.c.bf16 %v415_v58, %v414_v59 }
 0x1bb   :  { %v1153_v62 = vpop.f32.mrf.mxu1 }
 0x1bc   :  { %v381_v21 = vadd.f32 %v1153_v62, %v999_v4  ;;  %v420_v36 = vmax.f32 %v366_v23, 0.0 }
 0x1bd   :  { %v375_v63 = vpop.f32.mrf.mxu1 }
 0x1be   :  { %v376_v18 = vadd.f32 %v999_v4, %v375_v63  ;;  %v423_v34 = vmax.f32 %v381_v21, 0.0  ;;  %v433_v42 = vpack.c.bf16 %v421_v39, %v420_v36  ;;  %v740_v63 = vlaneseq }
 0x1bf   :  { %v1156_v0 = vpop.f32.mrf.mxu1 }
 0x1c0   :  { %v391_v15 = vadd.f32 %v1156_v0, %v999_v4  ;;  %v422_v24 = vmax.f32 %v376_v18, 0.0  ;;  %v1528_v0 = vand.u32 127, %v740_v63 }
 0x1c1   :  { %v385_v1 = vpop.f32.mrf.mxu1 }
 0x1c2   :  { %v386_v11 = vadd.f32 %v999_v4, %v385_v1  ;;  %v425_v22 = vmax.f32 %v391_v15, 0.0  ;;  %v434_v37 = vpack.c.bf16 %v423_v34, %v422_v24  ;;  %v1533_v1 = vld [vmem:[%s1893_s5] ss:$0 sm:$0xff]  ;;  %vm742_vm2 = vcmp.lt.s32.totalorder %v1528_v0, 8 }
 0x1c3   :  { %v1159_v2 = vpop.f32.mrf.mxu1 }
 0x1c4   :  { %v401_v9 = vadd.f32 %v1159_v2, %v999_v4  ;;  %v424_v19 = vmax.f32 %v386_v11, 0.0 }
 0x1c5   :  { %v395_v3 = vpop.f32.mrf.mxu1 }
 0x1c6   :  { %v396_v6 = vadd.f32 %v999_v4, %v395_v3  ;;  %v427_v16 = vmax.f32 %v401_v9, 0.0  ;;  %v435_v32 = vpack.c.bf16 %v425_v22, %v424_v19 }
 0x1c7   :  { %v1162_v5 = vpop.f32.mrf.mxu1 }
 0x1c8   :  { %v411_v7 = vadd.f32 %v1162_v5, %v999_v4  ;;  %v426_v12 = vmax.f32 %v396_v6, 0.0 }
 0x1c9   :  { %v405_v8 = vpop.f32.mrf.mxu1 }
 0x1ca   :  { %v406_v10 = vadd.f32 %v999_v4, %v405_v8  ;;  %v429_v13 = vmax.f32 %v411_v7, 0.0  ;;  %v436_v20 = vpack.c.bf16 %v427_v16, %v426_v12 }
 0x1cc   :  { %v428_v14 = vmax.f32 %v406_v10, 0.0 }
 0x1ce   :  { %v437_v17 = vpack.c.bf16 %v429_v13, %v428_v14 }
 0x1d0   :  { %1163 = vmatprep.subr.bf16.mxu1 %v437_v17 }
 0x1d1   :  { %1164 = vmatpush3.bf16.msra.mxu1 %v437_v17 }
 0x1d2   :  { %1165 = vmatprep.subr.bf16.mxu1 %v436_v20 }
 0x1d5   :  { %1166 = vmatpush3.bf16.msra.mxu1 %v436_v20 }
 0x1d6   :  { %1167 = vmatprep.subr.bf16.mxu1 %v435_v32 }
 0x1d9   :  { %1168 = vmatpush3.bf16.msra.mxu1 %v435_v32 }
 0x1da   :  { %1169 = vmatprep.subr.bf16.mxu1 %v434_v37 }
 0x1dd   :  { %1170 = vmatpush3.bf16.msra.mxu1 %v434_v37 }
 0x1de   :  { %1171 = vmatprep.subr.bf16.mxu1 %v433_v42 }
 0x1e1   :  { %1172 = vmatpush3.bf16.msra.mxu1 %v433_v42 }
 0x1e2   :  { %1173 = vmatprep.subr.bf16.mxu1 %v432_v47 }
 0x1e5   :  { %1174 = vmatpush3.bf16.msra.mxu1 %v432_v47 }
 0x1e6   :  { %1175 = vmatprep.subr.bf16.mxu1 %v431_v60 }
 0x1e9   :  { %1176 = vmatpush3.bf16.msra.mxu1 %v431_v60 }
 0x1ea   :  { %1177 = vmatprep.subr.bf16.mxu1 %v430_v61 }
 0x1ed   :  { %1178 = vmatpush3.bf16.msra.mxu1 %v430_v61 }
 0x1ee   :  { %1227 = vmatprep.subr.mxu1 %v1469_v50 }
 0x1f0   :  { %1180 = vmatmul.mubr.bf16.vlgmr.msra.gmra.mxu1 %v1404_v25 }
 0x1f1   :  { %1183 = vmatprep.mubr.bf16.mxu1 %v1409_v26  ;;  %1231 = vmatpush3.msra.mxu1 %v1469_v50 }
 0x1f2   :  { %1228 = vmatprep.subr.mxu1 %v1474_v51 }
 0x1f3   :  { %1232 = vmatpush3.msra.mxu1 %v1474_v51 }
 0x1f4   :  { %1229 = vmatprep.subr.mxu1 %v1481_v52 }
 0x1f5   :  { %1233 = vmatpush3.msra.mxu1 %v1481_v52 }
 0x1f6   :  { %1230 = vmatprep.subr.mxu1 %v1488_v53 }
 0x1f7   :  { %1234 = vmatpush3.msra.mxu1 %v1488_v53 }
 0x1f8   :  { %1184 = vmatmul.mubr.bf16.gmra.mxu1 %v1416_v27 }
 0x1f9   :  { %1187 = vmatprep.mubr.bf16.mxu1 %v1421_v28 }
 0x200   :  { %1188 = vmatmul.mubr.bf16.gmra.mxu1 %v1428_v29 }
 0x201   :  { %1191 = vmatprep.mubr.bf16.mxu1 %v1433_v30 }
 0x208   :  { %1192 = vmatmul.mubr.bf16.gmra.mxu1 %v1440_v31 }
 0x2b0   :  { %v1181_v25 = vpop.f32.mrf.mxu1 }
 0x2b2   :  { %v472_v26 = vpop.f32.mrf.mxu1 }
 0x2b3   :  { %1203 = vmatprep.mubr.msk.f32.mxu0 %vm546_vm1, %v472_v26 }
 0x2b4   :  { %v1182_v50 = vpop.f32.mrf.mxu1 }
 0x2b6   :  { %v475_v51 = vpop.f32.mrf.mxu1 }
 0x2b7   :  { %1204 = vmatmul.mubr.msk.f32.vlgmr.msra.gmra.mxu0 %vm546_vm1, %v475_v51 }
 0x2b8   :  { %v1185_v52 = vpop.f32.mrf.mxu1  ;;  %1206 = vmatprep.mubr.msk.f32.mxu0 %vm546_vm1, %v1181_v25 }
 0x2ba   :  { %v488_v27 = vpop.f32.mrf.mxu1 }
 0x2bb   :  { %1207 = vmatmul.mubr.msk.f32.gmra.mxu0 %vm546_vm1, %v1182_v50 }
 0x2bc   :  { %v1186_v28 = vpop.f32.mrf.mxu1  ;;  %1209 = vmatprep.mubr.msk.f32.mxu0 %vm546_vm1, %v488_v27 }
 0x2be   :  { %v491_v29 = vpop.f32.mrf.mxu1 }
 0x2bf   :  { %1210 = vmatmul.mubr.msk.f32.gmra.mxu0 %vm546_vm1, %v491_v29 }
 0x2c0   :  { %v1189_v30 = vpop.f32.mrf.mxu1  ;;  %1212 = vmatprep.mubr.msk.f32.mxu0 %vm546_vm1, %v1185_v52 }
 0x2c1   :  { %1218 = vmatprep.mubr.msk.f32.mxu1 %vm546_vm1, %v1189_v30 }
 0x2c2   :  { %v504_v31 = vpop.f32.mrf.mxu1 }
 0x2c3   :  { %1213 = vmatmul.mubr.msk.f32.gmra.mxu0 %vm546_vm1, %v1186_v28 }
 0x2c4   :  { %v1190_v53 = vpop.f32.mrf.mxu1  ;;  %1215 = vmatprep.mubr.msk.f32.mxu0 %vm546_vm1, %v504_v31 }
 0x2c5   :  { %1219 = vmatmul.mubr.msk.f32.vlgmr.msra.gmra.mxu1 %vm546_vm1, %v1190_v53 }
 0x2c6   :  { %v507_v54 = vpop.f32.mrf.mxu1 }
 0x2c7   :  { %1216 = vmatmul.mubr.msk.f32.gmra.mxu0 %vm546_vm1, %v507_v54 }
 0x2c8   :  { %v1193_v55 = vpop.f32.mrf.mxu1 }
 0x2ca   :  { %v520_v56 = vpop.f32.mrf.mxu1 }
 0x2cb   :  { %1221 = vmatprep.mubr.msk.f32.mxu1 %vm546_vm1, %v520_v56 }
 0x2cc   :  { %v1194_v57 = vpop.f32.mrf.mxu1 }
 0x2ce   :  { %v523_v62 = vpop.f32.mrf.mxu1 }
 0x2cf   :  { %1222 = vmatmul.mubr.msk.f32.gmra.mxu1 %vm546_vm1, %v523_v62 }
 0x2d0   :  { %1224 = vmatprep.mubr.msk.f32.mxu1 %vm546_vm1, %v1193_v55 }
 0x2d3   :  { %1225 = vmatmul.mubr.msk.f32.gmra.mxu1 %vm546_vm1, %v1194_v57 }
 0x377   :  { %v1205_v2 = vpop.f32.mrf.mxu0 }
 0x378   :  { %v1537_v3 = vadd.f32 %v1205_v2, %v1533_v1 }
 0x379   :  { %v661_v4 = vpop.f32.mrf.mxu0 }
 0x37a   :  { %952 = vst [vmem:[%s1894_s6 + $0x8] sm:$0xff] %v1537_v3  ;;  %v1544_v5 = vadd.f32 %v1533_v1, %v661_v4  ;;  %v744_v6 = vsel %vm742_vm2, %v1537_v3, -inf }
 0x37b   :  { %761 = vmax.xlane.f32.xlu0 %v744_v6  ;;  %v1208_v7 = vpop.f32.mrf.mxu0 }
 0x37c   :  { %951 = vst [vmem:[%s1894_s6] sm:$0xff] %v1544_v5  ;;  %v1554_v8 = vadd.f32 %v1208_v7, %v1533_v1  ;;  %v743_v12 = vsel %vm742_vm2, %v1544_v5, -inf }
 0x37d   :  { %v671_v9 = vpop.f32.mrf.mxu0 }
 0x37e   :  { %954 = vst [vmem:[%s1894_s6 + $0x18] sm:$0xff] %v1554_v8  ;;  %v1561_v10 = vadd.f32 %v1533_v1, %v671_v9  ;;  %v746_v11 = vsel %vm742_vm2, %v1554_v8, -inf }
 0x37f   :  { %765 = vmax.xlane.f32.xlu1 %v746_v11  ;;  %759 = vmax.xlane.f32.xlu0 %v743_v12  ;;  %v1211_v13 = vpop.f32.mrf.mxu0 }
 0x380   :  { %953 = vst [vmem:[%s1894_s6 + $0x10] sm:$0xff] %v1561_v10  ;;  %v1574_v14 = vadd.f32 %v1211_v13, %v1533_v1  ;;  %v745_v17 = vsel %vm742_vm2, %v1561_v10, -inf }
 0x381   :  { %v681_v15 = vpop.f32.mrf.mxu0 }
 0x382   :  { %956 = vst [vmem:[%s1894_s6 + $0x28] sm:$0xff] %v1574_v14  ;;  %v1581_v16 = vadd.f32 %v1533_v1, %v681_v15  ;;  %v748_v32 = vsel %vm742_vm2, %v1574_v14, -inf }
 0x383   :  { %763 = vmax.xlane.f32.xlu1 %v745_v17  ;;  %v1214_v18 = vpop.f32.mrf.mxu0 }
 0x384   :  { %955 = vst [vmem:[%s1894_s6 + $0x20] sm:$0xff] %v1581_v16  ;;  %v1591_v19 = vadd.f32 %v1214_v18, %v1533_v1  ;;  %v747_v20 = vsel %vm742_vm2, %v1581_v16, -inf }
 0x385   :  { %v691_v21 = vpop.f32.mrf.mxu0  ;;  %767 = vmax.xlane.f32.xlu0 %v747_v20  ;;  %v1220_v22 = vpop.f32.mrf.mxu1 }
 0x386   :  { %958 = vst [vmem:[%s1894_s6 + $0x38] sm:$0xff] %v1591_v19  ;;  %v1601_v23 = vadd.f32 %v1533_v1, %v691_v21  ;;  %v1604_v24 = vadd.f32 %v1220_v22, %v1533_v1  ;;  %v750_v40 = vsel %vm742_vm2, %v1591_v19, -inf }
 0x387   :  { %769 = vmax.xlane.f32.xlu1 %v748_v32  ;;  %v1217_v33 = vpop.f32.mrf.mxu0  ;;  %v711_v34 = vpop.f32.mrf.mxu1 }
 0x388   :  { %957 = vst [vmem:[%s1894_s6 + $0x30] sm:$0xff] %v1601_v23  ;;  %962 = vst [vmem:[%s1894_s6 + $0x58] sm:$0xff] %v1604_v24  ;;  %v1618_v35 = vadd.f32 %v1217_v33, %v1533_v1  ;;  %v1621_v36 = vadd.f32 %v1533_v1, %v711_v34  ;;  %v749_v37 = vsel %vm742_vm2, %v1601_v23, -inf  ;;  %v754_v42 = vsel %vm742_vm2, %v1604_v24, -inf }
 0x389   :  { %771 = vmax.xlane.f32.xlu0 %v749_v37  ;;  %v701_v38 = vpop.f32.mrf.mxu0 }
 0x38a   :  { %960 = vst [vmem:[%s1894_s6 + $0x48] sm:$0xff] %v1618_v35  ;;  %961 = vst [vmem:[%s1894_s6 + $0x50] sm:$0xff] %v1621_v36  ;;  %v1635_v39 = vadd.f32 %v1533_v1, %v701_v38  ;;  %v753_v41 = vsel %vm742_vm2, %v1621_v36, -inf  ;;  %v752_v48 = vsel %vm742_vm2, %v1618_v35, -inf }
 0x38b   :  { %773 = vmax.xlane.f32.xlu1 %v750_v40 }
 0x38c   :  { %959 = vst [vmem:[%s1894_s6 + $0x40] sm:$0xff] %v1635_v39  ;;  %v751_v45 = vsel %vm742_vm2, %v1635_v39, -inf }
 0x38d   :  { %779 = vmax.xlane.f32.xlu0 %v753_v41 }
 0x38f   :  { %781 = vmax.xlane.f32.xlu1 %v754_v42  ;;  %v1223_v43 = vpop.f32.mrf.mxu1 }
 0x390   :  { %v1651_v44 = vadd.f32 %v1223_v43, %v1533_v1 }
 0x391   :  { %v721_v46 = vpop.f32.mrf.mxu1  ;;  %775 = vmax.xlane.f32.xlu0 %v751_v45 }
 0x392   :  { %964 = vst [vmem:[%s1894_s6 + $0x68] sm:$0xff] %v1651_v44  ;;  %v1661_v47 = vadd.f32 %v1533_v1, %v721_v46  ;;  %v756_v25 = vsel %vm742_vm2, %v1651_v44, -inf }
 0x393   :  { %777 = vmax.xlane.f32.xlu1 %v752_v48  ;;  %v1226_v49 = vpop.f32.mrf.mxu1 }
 0x394   :  { %963 = vst [vmem:[%s1894_s6 + $0x60] sm:$0xff] %v1661_v47  ;;  %v1671_v59 = vadd.f32 %v1226_v49, %v1533_v1  ;;  %v755_v60 = vsel %vm742_vm2, %v1661_v47, -inf }
 0x395   :  { %v731_v58 = vpop.f32.mrf.mxu1  ;;  %783 = vmax.xlane.f32.xlu0 %v755_v60 }
 0x396   :  { %966 = vst [vmem:[%s1894_s6 + $0x78] sm:$0xff] %v1671_v59  ;;  %v1681_v61 = vadd.f32 %v1533_v1, %v731_v58  ;;  %v758_v50 = vsel %vm742_vm2, %v1671_v59, -inf }
 0x397   :  { %785 = vmax.xlane.f32.xlu1 %v756_v25 }
 0x398   :  { %965 = vst [vmem:[%s1894_s6 + $0x70] sm:$0xff] %v1681_v61  ;;  %v757_v26 = vsel %vm742_vm2, %v1681_v61, -inf }
 0x399   :  { %787 = vmax.xlane.f32.xlu0 %v757_v26 }
 0x39b   :  { %789 = vmax.xlane.f32.xlu1 %v758_v50 }
 0x404   :  { %v762_v51 = vpop.xlane.xlu0 %761 }
 0x405   :  { %v1697_v52 = vsub.f32 %v1537_v3, %v762_v51 }
 0x407   :  { %v809_v27 = vmul.f32 1.442695, %v1697_v52 }
 0x408   :  { %v766_v28 = vpop.xlane.xlu1 %765  ;;  %v760_v29 = vpop.xlane.xlu0 %759 }
 0x409   :  { %1243 = vpow2.f32 %v809_v27  ;;  %v1701_v30 = vsub.f32 %v1554_v8, %v766_v28  ;;  %v1704_v31 = vsub.f32 %v1544_v5, %v760_v29 }
 0x40b   :  { %v813_v53 = vmul.f32 1.442695, %v1701_v30  ;;  %v807_v54 = vmul.f32 1.442695, %v1704_v31 }
 0x40c   :  { %v764_v55 = vpop.xlane.xlu1 %763 }
 0x40d   :  { %1245 = vpow2.f32 %v813_v53  ;;  %v1709_v56 = vsub.f32 %v1561_v10, %v764_v55 }
 0x40e   :  { %1247 = vpow2.f32 %v807_v54  ;;  %v768_v57 = vpop.xlane.xlu0 %767 }
 0x40f   :  { %v811_v62 = vmul.f32 1.442695, %v1709_v56  ;;  %v1713_v63 = vsub.f32 %v1581_v16, %v768_v57 }
 0x410   :  { %v770_v1 = vpop.xlane.xlu1 %769 }
 0x411   :  { %1249 = vpow2.f32 %v811_v62  ;;  %v815_v2 = vmul.f32 1.442695, %v1713_v63  ;;  %v1717_v3 = vsub.f32 %v1574_v14, %v770_v1 }
 0x412   :  { %v772_v4 = vpop.xlane.xlu0 %771 }
 0x413   :  { %v817_v5 = vmul.f32 1.442695, %v1717_v3  ;;  %v1721_v6 = vsub.f32 %v1601_v23, %v772_v4  ;;  %1251 = vpow2.f32 %v815_v2 }
 0x414   :  { %v774_v7 = vpop.xlane.xlu1 %773 }
 0x415   :  { %1253 = vpow2.f32 %v817_v5  ;;  %v819_v8 = vmul.f32 1.442695, %v1721_v6  ;;  %v1725_v9 = vsub.f32 %v1591_v19, %v774_v7 }
 0x416   :  { %v1244_v10 = vpop.eup %1243  ;;  %v780_v11 = vpop.xlane.xlu0 %779 }
 0x417   :  { %v821_v12 = vmul.f32 1.442695, %v1725_v9  ;;  %v1729_v13 = vsub.f32 %v1621_v36, %v780_v11  ;;  %v840_v14 = vsel %vm742_vm2, %v1244_v10, 0.0  ;;  %1255 = vpow2.f32 %v819_v8 }
 0x418   :  { %v782_v15 = vpop.xlane.xlu1 %781  ;;  %857 = vadd.xlane.f32.xlu1 %v840_v14 }
 0x419   :  { %1257 = vpow2.f32 %v821_v12  ;;  %v827_v16 = vmul.f32 1.442695, %v1729_v13  ;;  %v1735_v17 = vsub.f32 %v1604_v24, %v782_v15 }
 0x41a   :  { %v1246_v18 = vpop.eup %1245  ;;  %v776_v19 = vpop.xlane.xlu0 %775 }
 0x41b   :  { %v1248_v20 = vpop.eup %1247  ;;  %v829_v21 = vmul.f32 1.442695, %v1735_v17  ;;  %v1739_v22 = vsub.f32 %v1635_v39, %v776_v19  ;;  %v842_v23 = vsel %vm742_vm2, %v1246_v18, 0.0  ;;  %1259 = vpow2.f32 %v827_v16 }
 0x41c   :  { %v778_v32 = vpop.xlane.xlu1 %777  ;;  %861 = vadd.xlane.f32.xlu1 %v842_v23  ;;  %v839_v33 = vsel %vm742_vm2, %v1248_v20, 0.0 }
 0x41d   :  { %1261 = vpow2.f32 %v829_v21  ;;  %v823_v24 = vmul.f32 1.442695, %v1739_v22  ;;  %v1747_v34 = vsub.f32 %v1618_v35, %v778_v32  ;;  %855 = vadd.xlane.f32.xlu0 %v839_v33 }
 0x41e   :  { %v1250_v36 = vpop.eup %1249  ;;  %v784_v37 = vpop.xlane.xlu0 %783 }
 0x41f   :  { %v825_v38 = vmul.f32 1.442695, %v1747_v34  ;;  %v1751_v39 = vsub.f32 %v1661_v47, %v784_v37  ;;  %v841_v40 = vsel %vm742_vm2, %v1250_v36, 0.0  ;;  %1263 = vpow2.f32 %v823_v24 }
 0x420   :  { %v786_v41 = vpop.xlane.xlu1 %785  ;;  %v1252_v42 = vpop.eup %1251 }
 0x421   :  { %1265 = vpow2.f32 %v825_v38  ;;  %v831_v43 = vmul.f32 1.442695, %v1751_v39  ;;  %v1757_v35 = vsub.f32 %v1651_v44, %v786_v41  ;;  %859 = vadd.xlane.f32.xlu0 %v841_v40  ;;  %v843_v58 = vsel %vm742_vm2, %v1252_v42, 0.0 }
 0x422   :  { %v1254_v45 = vpop.eup %1253  ;;  %v788_v46 = vpop.xlane.xlu0 %787 }
 0x423   :  { %v833_v48 = vmul.f32 1.442695, %v1757_v35  ;;  %v1761_v47 = vsub.f32 %v1681_v61, %v788_v46  ;;  %v844_v49 = vsel %vm742_vm2, %v1254_v45, 0.0  ;;  %1267 = vpow2.f32 %v831_v43 }
 0x424   :  { %865 = vadd.xlane.f32.xlu1 %v844_v49  ;;  %v790_v60 = vpop.xlane.xlu1 %789  ;;  %v1256_v25 = vpop.eup %1255 }
 0x425   :  { %1269 = vpow2.f32 %v833_v48  ;;  %v835_v44 = vmul.f32 1.442695, %v1761_v47  ;;  %v1769_v26 = vsub.f32 %v1671_v59, %v790_v60  ;;  %863 = vadd.xlane.f32.xlu0 %v843_v58  ;;  %v845_v27 = vsel %vm742_vm2, %v1256_v25, 0.0 }
 0x426   :  { %v1258_v50 = vpop.eup %1257 }
 0x427   :  { %v837_v61 = vmul.f32 1.442695, %v1769_v26  ;;  %v846_v51 = vsel %vm742_vm2, %v1258_v50, 0.0  ;;  %1271 = vpow2.f32 %v835_v44 }
 0x428   :  { %869 = vadd.xlane.f32.xlu1 %v846_v51  ;;  %v1260_v28 = vpop.eup %1259 }
 0x429   :  { %1273 = vpow2.f32 %v837_v61  ;;  %867 = vadd.xlane.f32.xlu0 %v845_v27  ;;  %v849_v53 = vsel %vm742_vm2, %v1260_v28, 0.0 }
 0x42a   :  { %v1262_v29 = vpop.eup %1261 }
 0x42b   :  { %v850_v59 = vsel %vm742_vm2, %v1262_v29, 0.0 }
 0x42c   :  { %877 = vadd.xlane.f32.xlu1 %v850_v59  ;;  %v1264_v54 = vpop.eup %1263 }
 0x42d   :  { %875 = vadd.xlane.f32.xlu0 %v849_v53  ;;  %v847_v62 = vsel %vm742_vm2, %v1264_v54, 0.0 }
 0x42e   :  { %v1266_v55 = vpop.eup %1265 }
 0x42f   :  { %v848_v57 = vsel %vm742_vm2, %v1266_v55, 0.0 }
 0x430   :  { %873 = vadd.xlane.f32.xlu1 %v848_v57  ;;  %v1268_v1 = vpop.eup %1267 }
 0x431   :  { %871 = vadd.xlane.f32.xlu0 %v847_v62  ;;  %v851_v5 = vsel %vm742_vm2, %v1268_v1, 0.0 }
 0x432   :  { %v1270_v2 = vpop.eup %1269 }
 0x433   :  { %v852_v4 = vsel %vm742_vm2, %v1270_v2, 0.0 }
 0x434   :  { %881 = vadd.xlane.f32.xlu1 %v852_v4  ;;  %v1272_v7 = vpop.eup %1271 }
 0x435   :  { %879 = vadd.xlane.f32.xlu0 %v851_v5  ;;  %v853_v11 = vsel %vm742_vm2, %v1272_v7, 0.0 }
 0x436   :  { %v1274_v8 = vpop.eup %1273 }
 0x437   :  { %v854_v10 = vsel %vm742_vm2, %v1274_v8, 0.0 }
 0x438   :  { %885 = vadd.xlane.f32.xlu1 %v854_v10 }
 0x439   :  { %883 = vadd.xlane.f32.xlu0 %v853_v11 }
 0x4a1   :  { %v858_v12 = vpop.xlane.xlu1 %857 }
 0x4a2   :  { %1275 = vlog2.f32 %v858_v12 }
 0x4a5   :  { %v862_v14 = vpop.xlane.xlu1 %861 }
 0x4a6   :  { %1277 = vlog2.f32 %v862_v14  ;;  %v856_v15 = vpop.xlane.xlu0 %855 }
 0x4a7   :  { %1279 = vlog2.f32 %v856_v15 }
 0x4aa   :  { %v860_v16 = vpop.xlane.xlu0 %859 }
 0x4ab   :  { %1281 = vlog2.f32 %v860_v16 }
 0x4ad   :  { %v866_v18 = vpop.xlane.xlu1 %865 }
 0x4ae   :  { %1283 = vlog2.f32 %v866_v18  ;;  %v864_v19 = vpop.xlane.xlu0 %863 }
 0x4af   :  { %v1276_v20 = vpop.eup %1275  ;;  %1285 = vlog2.f32 %v864_v19 }
 0x4b0   :  { %v890_v21 = vmul.f32 0.6931472, %v1276_v20 }
 0x4b1   :  { %v870_v23 = vpop.xlane.xlu1 %869 }
 0x4b2   :  { %v920_v32 = vsub.f32 %v1697_v52, %v890_v21  ;;  %1287 = vlog2.f32 %v870_v23  ;;  %v868_v33 = vpop.xlane.xlu0 %867 }
 0x4b3   :  { %v1278_v24 = vpop.eup %1277  ;;  %1289 = vlog2.f32 %v868_v33 }
 0x4b4   :  { %v1280_v36 = vpop.eup %1279  ;;  %v936_v37 = vsel %vm742_vm2, %v920_v32, 0.0  ;;  %v894_v38 = vmul.f32 0.6931472, %v1278_v24 }
 0x4b5   :  { %968 = vst [vmem:[%s1895_s7 + $0x8] sm:$0xff] %v936_v37  ;;  %v888_v40 = vmul.f32 0.6931472, %v1280_v36  ;;  %v878_v41 = vpop.xlane.xlu1 %877 }
 0x4b6   :  { %v922_v42 = vsub.f32 %v1701_v30, %v894_v38  ;;  %1291 = vlog2.f32 %v878_v41  ;;  %v876_v43 = vpop.xlane.xlu0 %875 }
 0x4b7   :  { %v919_v52 = vsub.f32 %v1704_v31, %v888_v40  ;;  %1293 = vlog2.f32 %v876_v43 }
 0x4b8   :  { %v1282_v45 = vpop.eup %1281  ;;  %v938_v46 = vsel %vm742_vm2, %v922_v42, 0.0 }
 0x4b9   :  { %970 = vst [vmem:[%s1895_s7 + $0x18] sm:$0xff] %v938_v46  ;;  %v935_v48 = vsel %vm742_vm2, %v919_v52, 0.0  ;;  %v892_v49 = vmul.f32 0.6931472, %v1282_v45  ;;  %v874_v60 = vpop.xlane.xlu1 %873 }
 0x4ba   :  { %967 = vst [vmem:[%s1895_s7] sm:$0xff] %v935_v48  ;;  %1295 = vlog2.f32 %v874_v60  ;;  %v872_v30 = vpop.xlane.xlu0 %871 }
 0x4bb   :  { %v1284_v31 = vpop.eup %1283  ;;  %v921_v58 = vsub.f32 %v1709_v56, %v892_v49  ;;  %1297 = vlog2.f32 %v872_v30 }
 0x4bc   :  { %v1286_v25 = vpop.eup %1285  ;;  %v898_v44 = vmul.f32 0.6931472, %v1284_v31 }
 0x4bd   :  { %v937_v50 = vsel %vm742_vm2, %v921_v58, 0.0  ;;  %v896_v61 = vmul.f32 0.6931472, %v1286_v25  ;;  %v882_v51 = vpop.xlane.xlu1 %881 }
 0x4be   :  { %969 = vst [vmem:[%s1895_s7 + $0x10] sm:$0xff] %v937_v50  ;;  %v924_v27 = vsub.f32 %v1717_v3, %v898_v44  ;;  %1299 = vlog2.f32 %v882_v51  ;;  %v880_v28 = vpop.xlane.xlu0 %879 }
 0x4bf   :  { %v1288_v29 = vpop.eup %1287  ;;  %v923_v59 = vsub.f32 %v1713_v63, %v896_v61  ;;  %1301 = vlog2.f32 %v880_v28 }
 0x4c0   :  { %v1290_v56 = vpop.eup %1289  ;;  %v940_v53 = vsel %vm742_vm2, %v924_v27, 0.0  ;;  %v902_v54 = vmul.f32 0.6931472, %v1288_v29 }
 0x4c1   :  { %972 = vst [vmem:[%s1895_s7 + $0x28] sm:$0xff] %v940_v53  ;;  %v939_v55 = vsel %vm742_vm2, %v923_v59, 0.0  ;;  %v900_v57 = vmul.f32 0.6931472, %v1290_v56  ;;  %v886_v3 = vpop.xlane.xlu1 %885 }
 0x4c2   :  { %971 = vst [vmem:[%s1895_s7 + $0x20] sm:$0xff] %v939_v55  ;;  %v926_v63 = vsub.f32 %v1725_v9, %v902_v54  ;;  %1303 = vlog2.f32 %v886_v3  ;;  %v884_v62 = vpop.xlane.xlu0 %883 }
 0x4c3   :  { %v1292_v1 = vpop.eup %1291  ;;  %v925_v2 = vsub.f32 %v1721_v6, %v900_v57  ;;  %1305 = vlog2.f32 %v884_v62 }
 0x4c4   :  { %v1294_v4 = vpop.eup %1293  ;;  %v942_v5 = vsel %vm742_vm2, %v926_v63, 0.0  ;;  %v910_v7 = vmul.f32 0.6931472, %v1292_v1 }
 0x4c5   :  { %974 = vst [vmem:[%s1895_s7 + $0x38] sm:$0xff] %v942_v5  ;;  %v941_v8 = vsel %vm742_vm2, %v925_v2, 0.0  ;;  %v908_v10 = vmul.f32 0.6931472, %v1294_v4 }
 0x4c6   :  { %973 = vst [vmem:[%s1895_s7 + $0x30] sm:$0xff] %v941_v8  ;;  %v930_v6 = vsub.f32 %v1735_v17, %v910_v7 }
 0x4c7   :  { %v1296_v9 = vpop.eup %1295  ;;  %v929_v11 = vsub.f32 %v1729_v13, %v908_v10 }
 0x4c8   :  { %v1298_v12 = vpop.eup %1297  ;;  %v946_v14 = vsel %vm742_vm2, %v930_v6, 0.0  ;;  %v906_v15 = vmul.f32 0.6931472, %v1296_v9 }
 0x4c9   :  { %978 = vst [vmem:[%s1895_s7 + $0x58] sm:$0xff] %v946_v14  ;;  %v945_v16 = vsel %vm742_vm2, %v929_v11, 0.0  ;;  %v904_v18 = vmul.f32 0.6931472, %v1298_v12 }
 0x4ca   :  { %977 = vst [vmem:[%s1895_s7 + $0x50] sm:$0xff] %v945_v16  ;;  %v928_v17 = vsub.f32 %v1747_v34, %v906_v15 }
 0x4cb   :  { %v1300_v13 = vpop.eup %1299  ;;  %v927_v19 = vsub.f32 %v1739_v22, %v904_v18 }
 0x4cc   :  { %v1302_v20 = vpop.eup %1301  ;;  %v944_v21 = vsel %vm742_vm2, %v928_v17, 0.0  ;;  %v914_v23 = vmul.f32 0.6931472, %v1300_v13 }
 0x4cd   :  { %976 = vst [vmem:[%s1895_s7 + $0x48] sm:$0xff] %v944_v21  ;;  %v943_v32 = vsel %vm742_vm2, %v927_v19, 0.0  ;;  %v912_v33 = vmul.f32 0.6931472, %v1302_v20 }
 0x4ce   :  { %975 = vst [vmem:[%s1895_s7 + $0x40] sm:$0xff] %v943_v32  ;;  %v932_v34 = vsub.f32 %v1757_v35, %v914_v23 }
 0x4cf   :  { %v1304_v22 = vpop.eup %1303  ;;  %v931_v24 = vsub.f32 %v1751_v39, %v912_v33 }
 0x4d0   :  { %v1306_v36 = vpop.eup %1305  ;;  %v948_v37 = vsel %vm742_vm2, %v932_v34, 0.0  ;;  %v918_v38 = vmul.f32 0.6931472, %v1304_v22 }
 0x4d1   :  { %980 = vst [vmem:[%s1895_s7 + $0x68] sm:$0xff] %v948_v37  ;;  %v947_v40 = vsel %vm742_vm2, %v931_v24, 0.0  ;;  %v916_v41 = vmul.f32 0.6931472, %v1306_v36 }
 0x4d2   :  { %979 = vst [vmem:[%s1895_s7 + $0x60] sm:$0xff] %v947_v40  ;;  %v934_v35 = vsub.f32 %v1769_v26, %v918_v38 }
 0x4d3   :  { %v933_v39 = vsub.f32 %v1761_v47, %v916_v41 }
 0x4d4   :  { %v950_v42 = vsel %vm742_vm2, %v934_v35, 0.0 }
 0x4d5   :  { %982 = vst [vmem:[%s1895_s7 + $0x78] sm:$0xff] %v950_v42  ;;  %v949_v43 = vsel %vm742_vm2, %v933_v39, 0.0 }
 0x4d6   :  { %981 = vst [vmem:[%s1895_s7 + $0x70] sm:$0xff] %v949_v43 }

</bundles_post_ra>
